<compile_context>
chip_gen: v7x
topology: tpu7x:2x2x1
jax: 0.10.0
libtpu: 0.0.40
codegen_flags: <defaults>
</compile_context>

<pallas_src>
import numpy as np

import jax
import jax.numpy as jnp
from jax.experimental import pallas as pl
from jax.experimental.pallas import tpu as pltpu

LANE = 128
KBLK = 128            # gene-axis block width (one lane-tile of x per K step)
TILE_B_CAP = 1024     # upper bound on batch rows per grid step
VMEM_BUDGET = 10 << 20  # conservative across v5e (16 MiB scoped) / v6e / v7x


def _round_up(n, m):
    return ((n + m - 1) // m) * m


def _pick_batch_tile(B, x_itemsize, out_itemsize, hidden, out_dim):
    """VMEM-budgeted, tile-balanced batch tile.

    Guarantees >= 2 grid steps for B >= 16 so dimension_semantics=("parallel",...)
    actually shards across v7x's two TensorCores (no-op on v5e/v6e)."""
    per_row = (2 * KBLK * x_itemsize      # double-buffered x block
               + 2 * out_dim * out_itemsize  # double-buffered output block
               + hidden * 4)              # f32 accumulator scratch
    cap = min(TILE_B_CAP, max(8, (VMEM_BUDGET // per_row) // 8 * 8))
    if B <= cap and B < 16:
        return B                          # single full-extent block (satisfies (8,128) rule)
    n_tiles = max(pl.cdiv(B, cap), 2 if B >= 16 else 1)
    return min(cap, _round_up(pl.cdiv(B, n_tiles), 8))


def _encoder_kernel(blk_ids_ref, x_ref, w1_ref, b1_ref, w2_ref, b2_ref, o_ref, acc_ref):
    # blk_ids_ref : SMEM (n_blocks,) int32   -- only used by the index_maps
    # x_ref       : (TB, KBLK)  activation block (caller dtype)
    # w1_ref      : (KBLK, H)   block-compacted first-layer weight (compute dtype)
    # b1_ref      : (1, H) f32   w2_ref: (H, O) compute dtype   b2_ref: (1, O) f32
    # o_ref       : (TB, O)      acc_ref: VMEM (TB, H) f32
    k = pl.program_id(1)

    @pl.when(k == 0)
    def _init():
        acc_ref[...] = jnp.zeros_like(acc_ref)

    xb = x_ref[...].astype(w1_ref.dtype)          # bf16 path: cast feeds native MXU rate
    acc_ref[...] += jnp.dot(xb, w1_ref[...], preferred_element_type=jnp.float32)

    @pl.when(k == pl.num_programs(1) - 1)
    def _finish():
        h = jnp.maximum(acc_ref[...] + b1_ref[...], 0.0)          # bias + ReLU in f32
        out = jnp.dot(h.astype(w2_ref.dtype), w2_ref[...],
                      preferred_element_type=jnp.float32) + b2_ref[...]
        o_ref[...] = out.astype(o_ref.dtype)


def prepare_params(gene_indices, w1, b1, w2, b2, num_genes,
                   compute_dtype=jnp.float32):
    """Host-side, once per (weights, gene_indices) change (hoisted per review).

    Returns the scalar-prefetch block-id table plus block-compacted weights."""
    gi = np.asarray(gene_indices).astype(np.int64)
    S, H = w1.shape
    assert gi.ndim == 1 and gi.size == S
    assert int(gi.max()) < num_genes and int(gi.min()) >= 0

    blocks = gi // KBLK
    uniq = np.unique(blocks)                       # sorted unique 128-col blocks of x
    pos = np.searchsorted(uniq, blocks)
    rows = pos * KBLK + (gi % KBLK)                # row in the compacted weight
    n_blocks = int(uniq.shape[0])

    # Scatter-add in f32 (duplicate indices sum, matching x[:, idx] @ w1 exactly),
    # then cast to the compute dtype.
    w1_scat = jnp.zeros((n_blocks * KBLK, H), jnp.float32)
    w1_scat = w1_scat.at[jnp.asarray(rows, jnp.int32)].add(jnp.asarray(w1, jnp.float32))

    return dict(
        blk_ids=jnp.asarray(uniq, jnp.int32),
        w1_scat=w1_scat.astype(compute_dtype),
        b1=jnp.asarray(b1, jnp.float32).reshape(1, H),
        w2=jnp.asarray(w2, jnp.float32).astype(compute_dtype),
        b2=jnp.asarray(b2, jnp.float32).reshape(1, -1),
    )


@jax.jit
def immune_signature_encoder_fwd(x, blk_ids, w1_scat, b1, w2, b2):
    """x: (B, G); blk_ids: (n_blocks,) int32; returns (B, O) in x.dtype."""
    B, G = x.shape
    n_blocks = int(blk_ids.shape[0])
    KH, H = w1_scat.shape
    O = w2.shape[1]
    assert KH == n_blocks * KBLK

    x_isz = x.dtype.itemsize
    o_isz = x.dtype.itemsize
    TB = _pick_batch_tile(B, x_isz, o_isz, H, O)
    grid = (pl.cdiv(B, TB), n_blocks)              # reduction (gene-block) axis last

    # Resident VMEM estimate -> explicit scoped limit (items 4/5).
    est = (2 * TB * KBLK * x_isz
           + 2 * KBLK * H * w1_scat.dtype.itemsize
           + 2 * H * O * w2.dtype.itemsize
           + 2 * (H + O) * 4
           + 2 * TB * O * o_isz
           + TB * H * 4)
    vmem_limit = int(min(32 << 20, max(16 << 20, 2 * est)))

    cost = pl.CostEstimate(
        flops=2 * B * (n_blocks * KBLK * H + H * O),
        transcendentals=0,
        bytes_accessed=(B * n_blocks * KBLK * x_isz
                        + KH * H * w1_scat.dtype.itemsize
                        + H * O * w2.dtype.itemsize
                        + (H + O) * 4
                        + B * O * o_isz),
    )

    return pl.pallas_call(
        _encoder_kernel,
        out_shape=jax.ShapeDtypeStruct((B, O), x.dtype),
        grid_spec=pltpu.PrefetchScalarGridSpec(
            num_scalar_prefetch=1,
            grid=grid,
            in_specs=[
                # Only the gene blocks that contain signature genes are ever DMA'd.
                pl.BlockSpec((TB, KBLK), lambda i, k, blk: (i, blk[k])),
                pl.BlockSpec((KBLK, H), lambda i, k, blk: (k, 0)),
                pl.BlockSpec((1, H), lambda i, k, blk: (0, 0)),
                pl.BlockSpec((H, O), lambda i, k, blk: (0, 0)),
                pl.BlockSpec((1, O), lambda i, k, blk: (0, 0)),
            ],
            out_specs=pl.BlockSpec((TB, O), lambda i, k, blk: (i, 0)),
            scratch_shapes=[pltpu.VMEM((TB, H), jnp.float32)],
        ),
        compiler_params=pltpu.CompilerParams(
            dimension_semantics=("parallel", "arbitrary"),
            vmem_limit_bytes=vmem_limit,
        ),
        cost_estimate=cost,
    )(blk_ids, x, w1_scat, b1, w2, b2)


def init_params(key, num_sig_genes, hidden=64, output_dim=32):
    """PyTorch-style Linear init: U(-1/sqrt(fan_in), 1/sqrt(fan_in)); (in, out) layout."""
    k1, k2, k3, k4 = jax.random.split(key, 4)
    bound1 = 1.0 / jnp.sqrt(jnp.float32(num_sig_genes))
    bound2 = 1.0 / jnp.sqrt(jnp.float32(hidden))
    w1 = jax.random.uniform(k1, (num_sig_genes, hidden), jnp.float32, -bound1, bound1)
    b1 = jax.random.uniform(k2, (1, hidden), jnp.float32, -bound1, bound1)
    w2 = jax.random.uniform(k3, (hidden, output_dim), jnp.float32, -bound2, bound2)
    b2 = jax.random.uniform(k4, (1, output_dim), jnp.float32, -bound2, bound2)
    return w1, b1, w2, b2


if __name__ == "__main__":
    key = jax.random.PRNGKey(0)
    kx, kp = jax.random.split(key)

    B, G, HIDDEN, OUT = 20, 512, 64, 32
    # Signature genes live in 128-blocks {0, 2, 3} of x's 4 blocks; block 1 is never
    # read by the kernel.  Index 300 is duplicated to exercise the scatter-add path.
    gene_indices = jnp.array(
        [7, 18, 63, 64, 120, 127, 300, 300, 301, 410, 450, 470, 471, 480, 500, 505],
        dtype=jnp.int32)
    S = int(gene_indices.shape[0])

    x = jax.random.normal(kx, (B, G), dtype=jnp.float32)
    w1, b1, w2, b2 = init_params(kp, S, hidden=HIDDEN, output_dim=OUT)

    # Pure-JAX reference (matches the PyTorch module semantics).
    ref = jnp.maximum(x[:, gene_indices] @ w1 + b1, 0.0) @ w2 + b2

    # --- f32 path: exact module semantics -----------------------------------
    p32 = prepare_params(gene_indices, w1, b1, w2, b2, num_genes=G,
                         compute_dtype=jnp.float32)
    out32 = immune_signature_encoder_fwd(
        x, p32["blk_ids"], p32["w1_scat"], p32["b1"], p32["w2"], p32["b2"])
    out32 = jax.block_until_ready(out32)
    assert out32.shape == (B, OUT)
    err32 = float(jnp.max(jnp.abs(out32 - ref)))
    assert jnp.allclose(out32, ref, atol=1e-4, rtol=1e-4), err32

    # --- bf16 path: memory-bound production config (review item 3) ----------
    pbf = prepare_params(gene_indices, w1, b1, w2, b2, num_genes=G,
                         compute_dtype=jnp.bfloat16)
    outbf = immune_signature_encoder_fwd(
        x.astype(jnp.bfloat16), pbf["blk_ids"], pbf["w1_scat"],
        pbf["b1"], pbf["w2"], pbf["b2"])
    outbf = jax.block_until_ready(outbf)
    errbf = float(jnp.max(jnp.abs(outbf.astype(jnp.float32) - ref)))
    assert jnp.allclose(outbf.astype(jnp.float32), ref, atol=5e-2, rtol=5e-2), errbf

    print("KERNEL_OK")
</pallas_src>

<mosaic_0001>
module attributes {stable_mosaic.version = 11 : i64} {
  func.func @_encoder_kernel(%arg0: i32, %arg1: i32, %arg2: memref<3xi32, #tpu.memory_space<smem>>, %arg3: memref<16x128xf32, #tpu.memory_space<vmem>>, %arg4: memref<128x64xf32, #tpu.memory_space<vmem>>, %arg5: memref<1x64xf32, #tpu.memory_space<vmem>>, %arg6: memref<64x32xf32, #tpu.memory_space<vmem>>, %arg7: memref<1x32xf32, #tpu.memory_space<vmem>>, %arg8: memref<16x32xf32, #tpu.memory_space<vmem>>, %arg9: memref<16x64xf32, #tpu.memory_space<vmem>>) attributes {dimension_semantics = [#tpu.dimension_semantics<parallel>, #tpu.dimension_semantics<arbitrary>], iteration_bounds = array<i64: 2, 3>, scalar_prefetch = 1 : i64, scratch_operands = 1 : i64, tpu.core_type = #tpu.core_type<tc>, window_params = [{transform_indices = @transform_0, window_bounds = array<i64: 16, 128>}, {transform_indices = @transform_1, window_bounds = array<i64: 128, 64>}, {pipeline_mode = #tpu.pipeline_mode<synchronous>, transform_indices = @transform_2, window_bounds = array<i64: 1, 64>}, {pipeline_mode = #tpu.pipeline_mode<synchronous>, transform_indices = @transform_3, window_bounds = array<i64: 64, 32>}, {pipeline_mode = #tpu.pipeline_mode<synchronous>, transform_indices = @transform_4, window_bounds = array<i64: 1, 32>}, {transform_indices = @transform_5, window_bounds = array<i64: 16, 32>}]} {
    %c0_i32 = arith.constant 0 : i32
    %0 = arith.cmpi eq, %arg1, %c0_i32 : i32
    %1 = arith.extui %0 : i1 to i32
    %c0_i32_0 = arith.constant 0 : i32
    %2 = arith.cmpi ne, %1, %c0_i32_0 : i32
    scf.if %2 {
      %cst_9 = arith.constant 0.000000e+00 : f32
      %12 = vector.broadcast %cst_9 : f32 to vector<16x64xf32>
      %c0_10 = arith.constant 0 : index
      %c0_11 = arith.constant 0 : index
      %13 = vector.load %arg9[%c0_10, %c0_11] : memref<16x64xf32, #tpu.memory_space<vmem>>, vector<16x64xf32>
      tpu.vector_store %arg9[%c0_10, %c0_11], %12 {strides = array<i32>} : memref<16x64xf32, #tpu.memory_space<vmem>>, vector<16x64xf32>,
    } else {
    }
    %c0 = arith.constant 0 : index
    %c0_1 = arith.constant 0 : index
    %3 = vector.load %arg3[%c0, %c0_1] : memref<16x128xf32, #tpu.memory_space<vmem>>, vector<16x128xf32>
    %c0_2 = arith.constant 0 : index
    %c0_3 = arith.constant 0 : index
    %4 = vector.load %arg9[%c0_2, %c0_3] : memref<16x64xf32, #tpu.memory_space<vmem>>, vector<16x64xf32>
    %c0_4 = arith.constant 0 : index
    %c0_5 = arith.constant 0 : index
    %5 = vector.load %arg4[%c0_4, %c0_5] : memref<128x64xf32, #tpu.memory_space<vmem>>, vector<128x64xf32>
    %cst = arith.constant dense<0.000000e+00> : vector<16x64xf32>
    %6 = tpu.matmul %3, %5, %cst {dimension_numbers = #tpu.dot_dimension_numbers<[1], [0], [0], [1], [0, 0, 1, 1], [], []>} : vector<16x128xf32>, vector<128x64xf32>, vector<16x64xf32> -> vector<16x64xf32>
    %7 = arith.addf %4, %6 : vector<16x64xf32>
    %c0_6 = arith.constant 0 : index
    %c0_7 = arith.constant 0 : index
    %8 = vector.load %arg9[%c0_6, %c0_7] : memref<16x64xf32, #tpu.memory_space<vmem>>, vector<16x64xf32>
    tpu.vector_store %arg9[%c0_6, %c0_7], %7 {strides = array<i32>} : memref<16x64xf32, #tpu.memory_space<vmem>>, vector<16x64xf32>,
    %c2_i32 = arith.constant 2 : i32
    %9 = arith.cmpi eq, %arg1, %c2_i32 : i32
    %10 = arith.extui %9 : i1 to i32
    %c0_i32_8 = arith.constant 0 : i32
    %11 = arith.cmpi ne, %10, %c0_i32_8 : i32
    scf.if %11 {
      %c0_9 = arith.constant 0 : index
      %c0_10 = arith.constant 0 : index
      %12 = vector.load %arg9[%c0_9, %c0_10] : memref<16x64xf32, #tpu.memory_space<vmem>>, vector<16x64xf32>
      %c0_11 = arith.constant 0 : index
      %c0_12 = arith.constant 0 : index
      %13 = vector.load %arg5[%c0_11, %c0_12] : memref<1x64xf32, #tpu.memory_space<vmem>>, vector<1x64xf32>
      %14 = vector.broadcast %13 : vector<1x64xf32> to vector<16x64xf32>
      %15 = arith.addf %12, %14 : vector<16x64xf32>
      %cst_13 = arith.constant 0.000000e+00 : f32
      %16 = vector.broadcast %cst_13 : f32 to vector<16x64xf32>
      %17 = arith.maximumf %15, %16 : vector<16x64xf32>
      %c0_14 = arith.constant 0 : index
      %c0_15 = arith.constant 0 : index
      %18 = vector.load %arg6[%c0_14, %c0_15] : memref<64x32xf32, #tpu.memory_space<vmem>>, vector<64x32xf32>
      %cst_16 = arith.constant dense<0.000000e+00> : vector<16x32xf32>
      %19 = tpu.matmul %17, %18, %cst_16 {dimension_numbers = #tpu.dot_dimension_numbers<[1], [0], [0], [1], [0, 0, 1, 1], [], []>} : vector<16x64xf32>, vector<64x32xf32>, vector<16x32xf32> -> vector<16x32xf32>
      %c0_17 = arith.constant 0 : index
      %c0_18 = arith.constant 0 : index
      %20 = vector.load %arg7[%c0_17, %c0_18] : memref<1x32xf32, #tpu.memory_space<vmem>>, vector<1x32xf32>
      %21 = vector.broadcast %20 : vector<1x32xf32> to vector<16x32xf32>
      %22 = arith.addf %19, %21 : vector<16x32xf32>
      %c0_19 = arith.constant 0 : index
      %c0_20 = arith.constant 0 : index
      %23 = vector.load %arg8[%c0_19, %c0_20] : memref<16x32xf32, #tpu.memory_space<vmem>>, vector<16x32xf32>
      tpu.vector_store %arg8[%c0_19, %c0_20], %22 {strides = array<i32>} : memref<16x32xf32, #tpu.memory_space<vmem>>, vector<16x32xf32>,
    } else {
    }
    return
  }
  func.func @transform_0(%arg0: i32, %arg1: i32, %arg2: memref<3xi32, #tpu.memory_space<smem>>) -> (i32, i32) {
    %0 = arith.index_cast %arg1 : i32 to index
    %1 = memref.load %arg2[%0] : memref<3xi32, #tpu.memory_space<smem>>
    %c0_i32 = arith.constant 0 : i32
    return %arg0, %1 : i32, i32
  }
  func.func @transform_1(%arg0: i32, %arg1: i32, %arg2: memref<3xi32, #tpu.memory_space<smem>>) -> (i32, i32) {
    %c0_i32 = arith.constant 0 : i32
    %c0_i32_0 = arith.constant 0 : i32
    return %arg1, %c0_i32 : i32, i32
  }
  func.func @transform_2(%arg0: i32, %arg1: i32, %arg2: memref<3xi32, #tpu.memory_space<smem>>) -> (i32, i32) {
    %c0_i32 = arith.constant 0 : i32
    %c0_i32_0 = arith.constant 0 : i32
    %c0_i32_1 = arith.constant 0 : i32
    return %c0_i32, %c0_i32_0 : i32, i32
  }
  func.func @transform_3(%arg0: i32, %arg1: i32, %arg2: memref<3xi32, #tpu.memory_space<smem>>) -> (i32, i32) {
    %c0_i32 = arith.constant 0 : i32
    %c0_i32_0 = arith.constant 0 : i32
    %c0_i32_1 = arith.constant 0 : i32
    return %c0_i32, %c0_i32_0 : i32, i32
  }
  func.func @transform_4(%arg0: i32, %arg1: i32, %arg2: memref<3xi32, #tpu.memory_space<smem>>) -> (i32, i32) {
    %c0_i32 = arith.constant 0 : i32
    %c0_i32_0 = arith.constant 0 : i32
    %c0_i32_1 = arith.constant 0 : i32
    return %c0_i32, %c0_i32_0 : i32, i32
  }
  func.func @transform_5(%arg0: i32, %arg1: i32, %arg2: memref<3xi32, #tpu.memory_space<smem>>) -> (i32, i32) {
    %c0_i32 = arith.constant 0 : i32
    %c0_i32_0 = arith.constant 0 : i32
    return %arg0, %c0_i32 : i32, i32
  }
}

</mosaic_0001>

<bundles_post_ra>
// kernel: immune_signature_encoder_fwd.1
= control target key start
LH: loop header
LB: loop body
LE: loop exit
PB: predicated region body
PF: predicated region fallthrough
CT: control target
= control target key end

     0   :  { %s1626_s0 = inlined_call_operand.vmem [shape: s32[3], index: 0, kind: input, shape index: {}]   ;;  %s1627_s1 = inlined_call_operand.vmem [shape: f32[20,512], index: 1, kind: input, shape index: {}]   ;;  %s1628_s2 = inlined_call_operand.vmem [shape: f32[384,64], index: 2, kind: input, shape index: {}]   ;;  %s1629_s3 = inlined_call_operand.vmem [shape: f32[1,64], index: 3, kind: input, shape index: {}]   ;;  %s1630_s4 = inlined_call_operand.vmem [shape: f32[64,32], index: 4, kind: input, shape index: {}]   ;;  %s1631_s5 = inlined_call_operand.vmem [shape: f32[1,32], index: 5, kind: input, shape index: {}]   ;;  %s1632_s6 = inlined_call_operand.hbm [shape: f32[20,32], index: 6, kind: output, shape index: {}]  }
   0x1   :  { %s11_s23 = sshll.u32 %s1626_s0, 4  ;;  %s12_s23 = int_to_ptr.vmem [resolvable:$true] %s11_s23 }
   0x2   :  { %s1107_s24 = scalar_lea.vmem %s12_s23, 16  ;;  %p1112_p1 = scmp.lt.s32.totalorder %s12_s23, %s12_s23 }
   0x3   :  { %p1108_p0 = scmp.ne.s32.totalorder %s12_s23, %s1107_s24  ;;  %p1113_p2 = scmp.lt.s32.totalorder %s1107_s24, %s1107_s24 }
   0x5   :  { %p1114_p3 = por %p1113_p2, %p1112_p1 }
   0x7   :  { %p1115_p4 = pnand %p1114_p3, %p1108_p0 }
   0x9   :  { %1118 = shalt.err (!%p1115_p4)  }
   0xa   :  { %s1297_s25 = smov [#allocation4]  }
   0xb   :  { %14 = dma.vmem_to_smem %s12_s23, 16, %s1297_s25, [#allocation3] }
   0xc   :  { %1219 = dma.done.wait [#allocation3], 16 }
   0xd   :  { %1220 = vsyncadd [#allocation3], 4294967280 }
   0xe   :  { %16 = sfence }
   0xf   :  { %17 = vsyncpa [#allocation7], 0 }
  0x10   :  { %19 = vsyncpa [#allocation7 + $0x1], 0  ;;  %s1340_s26 = smov 0   ;;  %s1342_s27 = smov 0  }
  0x11   :  { %s1344_s0 = smov 0   ;;  %s1346_s28 = smov 0  }
  0x12   :  { %s1348_s29 = smov 0   ;;  %s1350_s30 = smov 0  }
  0x13   :  { %s1352_s7 = smov 0   ;;  %s1354_s8 = smov 0  }
  0x14   :  { %s1356_s9 = smov 0   ;;  %s1358_s10 = smov 0  }
  0x15 LB: > { %s779_s11 = sadd.s32 4294967295, %s1263_s10   ;;  %s780_s12 = sadd.s32 4294967294, %s1263_s10   ;;  %s1263_s10 = sphi %s1358_s10, %s25_s10   ;;  %s1259_s9 = sphi %s1356_s9, %s1654_s9   ;;  %s1255_s8 = sphi %s1354_s8, %s1653_s8   ;;  %s1251_s7 = sphi %s1352_s7, %s1652_s7   ;;  %s1247_s30 = sphi %s1350_s30, %s1651_s30   ;;  %s1243_s29 = sphi %s1348_s29, %s1650_s29   ;;  %s1239_s28 = sphi %s1346_s28, %s1649_s28   ;;  %s1235_s0 = sphi %s1344_s0, %s1648_s0   ;;  %s1231_s27 = sphi %s1342_s27, %s1647_s27   ;;  %s1227_s26 = sphi %s1340_s26, %s1646_s26  }
  0x16   : > { %s34_s13 = sadd.s32 1, %s1255_s8  ;;  %s37_s14 = sadd.s32 1, %s1259_s9 }
  0x17   : > { %p35_p5 = scmp.ge.s32.totalorder %s34_s13, 3  ;;  %s41_s15 = sld [smem:[#allocation4 + %s1255_s8]] }
  0x18   : > { %s48_s16 = sadd.s32 1, %s1243_s29  ;;  %p55_p6 = scmp.ne.s32.totalorder %s1243_s29, %s1239_s28 }
  0x19   : > { %s1656_s13 = smov (%p35_p5, %s34_s13), 0  ;;  %s1658_s14 = smov (!%p35_p5, %s37_s14), %s1259_s9 }
  0x1a   : > { %1635 = sst [smem:[#allocation10_spill]] %s1656_s13  ;;  %p56_p7 = scmp.eq.s32.totalorder %s1263_s10, 0 }
  0x1b   : > { %s42_s17 = sld [smem:[#allocation4 + %s1656_s13]]  ;;  %p39_p8 = scmp.ge.s32.totalorder %s1658_s14, 2 }
  0x1c   : > { %s163_s18 = sadd.s32 1, %s1235_s0  ;;  %p1404_p9 = por %p56_p7, %p55_p6 }
  0x1d   : > { %p173_p10 = scmp.ne.s32.totalorder %s1235_s0, %s1231_s27  ;;  %s1660_s14 = smov (%p39_p8, %s1658_s14), 0 }
  0x1e   : > { %1637 = sst [smem:[#allocation11_spill]] %s1660_s14  ;;  %p174_p11 = scmp.eq.s32.totalorder %s779_s11, 5 }
  0x1f   : > { %p179_p12 = scmp.ne.s32.totalorder %s1231_s27, %s1227_s26  ;;  %s43_s20 = ssub.s32 %s1259_s9, %s1660_s14 }
  0x20   : > { %p180_p13 = scmp.eq.s32.totalorder %s780_s12, 5  ;;  %p161_p0 = scmp.eq.s32.totalorder %s43_s20, 0 }
  0x21   : > { %s44_s21 = ssub.s32 %s41_s15, %s42_s17  ;;  %p1416_p1 = por %p174_p11, %p173_p10 }
  0x22   : > { %s45_s22 = sor.u32 %s44_s21, %s43_s20  ;;  %p1420_p3 = por %p180_p13, %p179_p12 }
  0x23   : > { %p46_p2 = scmp.eq.s32.totalorder %s45_s22, 0  ;;  %p782_p4 = scmp.ge.s32.totalorder %s1263_s10, 6 }
  0x24   : > { %s1425_s25 = scalar_select %p161_p0, %s1235_s0, %s163_s18  }
  0x25   : > { %s1428_s13 = scalar_select %p46_p2, %s1243_s29, %s48_s16  }
  0x26   : > { %1640 = sst [smem:[#allocation12_spill]] %s1425_s25  ;;  %205 = sbr.rel (%p782_p4) target bundleno = 101 (0x65), region = 28 }
  0x27   : > { %1641 = sst [smem:[#allocation13_spill]] %s1428_s13 }
  0x2d   : > { %208 = sbr.rel (!%p1404_p9) target bundleno = 101 (0x65), region = 32  ;;  %s210_s11 = sand.u32 (%p1404_p9), 1, %s1243_s29  }
  0x2e   : > { %s213_s12 = sld [smem:[#allocation4 + %s1255_s8]] (%p1404_p9)  ;;  %s783_s15 = sshll.u32 (%p1404_p9), %s210_s11, 4 }
  0x2f   : > { %s784_s17 = sshll.u32 (%p1404_p9), %s1259_s9, 1  ;;  %s819_s18 = sshll.u32 (%p1404_p9), %s1259_s9, 3 }
  0x30   : > { %s215_s20 = ssub.s32 (%p1404_p9), 3, %s784_s17  ;;  %s1445_s25 = scalar_lea.vmem (%p1404_p9), [#allocation5], %s783_s15  }
  0x31   : > { %p216_p5 = scmp.lt.s32.totalorder (%p1404_p9), %s215_s20, 2 }
  0x34   : > { %s1662_s20 = smov (!%p216_p5, %s215_s20), 2  ;;  %s221_s16 = sadd.s32 %s819_s18, %s213_s12 }
  0x35   : > { %s785_s21 = sshll.u32 %s1662_s20, 7  ;;  %s788_s22 = sshll.u32 %s221_s16, 3 }
  0x36   : > { %s1443_s13 = scalar_lea.vmem %s1627_s1, %s788_s22   ;;  %p789_p6 = scmp.eq.s32.totalorder %s785_s21, 0 }
  0x37   : > { %s1448_s11 = sshrl.u32 (!%p789_p6), %s1662_s20, 1 }
  0x38   : > { %226 = sbr.rel (%p789_p6) target bundleno = 101 (0x65), region = 36  ;;  %p790_p7 = scmp.le.s32.totalorder (!%p789_p6), %s1448_s11, 0 }
  0x3f   : > { %718 = sbr.rel (%p790_p7) target bundleno = 80 (0x50), region = 145  ;;  %s1265_s12 = smov (!%p790_p7), %s1445_s25  }
  0x40   : > { %s1269_s17 = smov (!%p790_p7), %s1443_s13   ;;  %s1273_s18 = smov (!%p790_p7), 0  }
  0x41   : > { %s1277_s16 = smov (!%p790_p7), 0  }
  0x46 LB: >> { %v290_v0 = vld [vmem:[%s1271_s17] sm:$0xff]  ;;  %s294_s14 = sadd.s32 1, %s1275_s18  ;;  %s284_s16 = sadd.s32 1, %s1279_s16   ;;  %s1279_s16 = sphi %s1277_s16, %s284_s16   ;;  %s1275_s18 = sphi %s1273_s18, %s1274_s18   ;;  %s1271_s17 = sphi %s1269_s17, %s299_s17   ;;  %s1267_s12 = sphi %s1265_s12, %s300_s12  }
  0x47   : >> { %v292_v1 = vld [vmem:[%s1271_s17 + $0x20] sm:$0xff]  ;;  %291 = vst [vmem:[%s1267_s12] sm:$0xff] %v290_v0  ;;  %p295_p8 = scmp.ge.s32.totalorder %s294_s14, %s1448_s11  ;;  %p283_p9 = scmp.ge.s32.totalorder %s284_s16, %s1448_s11 }
  0x48   : >> { %293 = vst [vmem:[%s1267_s12 + $0x8] sm:$0xff] %v292_v1 }
  0x49   : >> { %s1664_s14 = smov (%p295_p8, %s294_s14), 0  ;;  %286 = sbr.rel (!%p283_p9) target bundleno = 70 (0x46), region = 151 }
  0x4a   : >> { %s791_s15 = sshll.u32 %s1664_s14, 6  ;;  %s792_s21 = sshll.u32 %s1664_s14, 4 }
  0x4b   : >> { %s299_s17 = scalar_lea.vmem %s1443_s13, %s791_s15   ;;  %s300_s12 = scalar_lea.vmem %s1445_s25, %s792_s21 [#allocation5]  }
  0x4c   : >> { %s1274_s18 = smov %s1664_s14  }
  0x50 PF: > { %s1458_s22 = sand.u32 1, %s1662_s20   ;;  %s820_s19 = sshll.u32 %s1448_s11, 6 }
  0x51   : > { %s1462_s18 = scalar_lea.vmem %s1443_s13, %s820_s19   ;;  %s821_s15 = sshll.u32 %s1448_s11, 4 }
  0x52   : > { %s307_s21 = scalar_lea.vmem %s1445_s25, %s821_s15 [#allocation5]   ;;  %p796_p10 = scmp.le.s32.totalorder %s1458_s22, 0 }
  0x53   : > { %s1281_s12 = smov (!%p796_p10), %s307_s21   ;;  %s1285_s17 = smov (!%p796_p10), %s1462_s18  }
  0x54   : > { %732 = sbr.rel (%p796_p10) target bundleno = 101 (0x65), region = 156  ;;  %s1289_s16 = smov (!%p796_p10), 0  }
  0x55   : > { %s1293_s14 = smov (!%p796_p10), 0  }
  0x5b LB: >> { %v317_v2 = vld [vmem:[%s1287_s17] sm:$0xff]  ;;  %s319_s13 = sadd.s32 1, %s1291_s16  ;;  %s311_s14 = sadd.s32 1, %s1295_s14   ;;  %s1295_s14 = sphi %s1293_s14, %s311_s14   ;;  %s1291_s16 = sphi %s1289_s16, %s1290_s16   ;;  %s1287_s17 = sphi %s1285_s17, %s324_s17   ;;  %s1283_s12 = sphi %s1281_s12, %s325_s12  }
  0x5c   : >> { %318 = vst [vmem:[%s1283_s12] sm:$0xff] %v317_v2  ;;  %p320_p11 = scmp.ge.s32.totalorder %s319_s13, %s1458_s22  ;;  %p310_p12 = scmp.ge.s32.totalorder %s311_s14, %s1458_s22 }
  0x5e   : >> { %s1666_s13 = smov (%p320_p11, %s319_s13), 0  ;;  %313 = sbr.rel (!%p310_p12) target bundleno = 91 (0x5b), region = 162 }
  0x5f   : >> { %s797_s25 = sshll.u32 %s1666_s13, 5  ;;  %s798_s20 = sshll.u32 %s1666_s13, 3 }
  0x60   : >> { %s324_s17 = scalar_lea.vmem %s1462_s18, %s797_s25   ;;  %s325_s12 = scalar_lea.vmem %s307_s21, %s798_s20 [#allocation5]  }
  0x61   : >> { %s1290_s16 = smov %s1666_s13  }
  0x65 PF: > { %p799_p13 = scmp.ge.s32.totalorder %s1263_s10, 1  ;;  %p339_p0 = scmp.lt.s32.totalorder %s1263_s10, 7 }
  0x67   : > { %p340_p2 = pnand %p799_p13, %p339_p0 }
  0x68   : > { %s346_s11 = sand.u32 (!%p340_p2), 1, %s1239_s28   ;;  %s375_s19 = sand.u32 (!%p340_p2), 1, %s1231_s27  }
  0x69   : > { %343 = sbr.rel (%p340_p2) target bundleno = 633 (0x279), region = 88  ;;  %s1475_s15 = sshll.u32 (!%p340_p2), %s346_s11, 4 }
  0x6a   : > { %s801_s22 = sshll.u32 (!%p340_p2), %s375_s19, 4  ;;  %s802_s18 = sshll.u32 (!%p340_p2), %s1247_s30, 4 }
  0x6b   : > { %p385_p4 = scmp.lt.s32.totalorder (!%p340_p2), %s802_s18, 47  ;;  %s348_s14 = scalar_lea.vmem (!%p340_p2), [#allocation5], %s1475_s15 }
  0x6c   : > { %s1486_s13 = scalar_lea.vmem (!%p340_p2), [#allocation6], %s801_s22  ;;  %p804_p5 = scmp.ne.s32.totalorder (!%p340_p2), %s1247_s30, 0 }
  0x70   : > { %s1668_s18 = smov (!%p385_p4, %s802_s18), 47  ;;  %398 = sbr.rel (%p804_p5) target bundleno = 119 (0x77), region = 96 }
  0x71   : > { %s803_s21 = sshll.u32 %s1668_s18, 3  ;;  %vm399_vm0 = vcmask (!%p804_p5), 523264   ;;  %v1298_v3 = vmov (!%p804_p5), 0.0  }
  0x72   : > { %s1483_s16 = scalar_lea.vmem %s1628_s2, %s803_s21  ;;  %400 = vst.msk [vmem:[#allocation2] sm:$0xff] (!%p804_p5), %vm399_vm0, %v1298_v3  ;;  %401 = vst.msk [vmem:[#allocation2 + $0x8] sm:$0xff] (!%p804_p5), %vm399_vm0, %v1298_v3 }
  0x77 PF: > { %v406_v4 = vld [vmem:[%s1483_s16] sm:$0xff]  ;;  %v407_v5 = vld [vmem:[%s1483_s16 + $0x8] sm:$0xff]  ;;  %v408_v6 = vld [vmem:[%s1483_s16 + $0x10] sm:$0xff]  ;;  %vm499_vm1 = vcmask 523264   ;;  %p805_p6 = scmp.ne.s32.totalorder %s1247_s30, 2 }
  0x78   : > { %v905_v7 = vpack.c.bf16 %v407_v5, %v406_v4  ;;  %v409_v8 = vld [vmem:[%s1483_s16 + $0x18] sm:$0xff]  ;;  %v410_v10 = vld [vmem:[%s1483_s16 + $0x20] sm:$0xff]  ;;  %v411_v11 = vld [vmem:[%s1483_s16 + $0x28] sm:$0xff]  ;;  %vm615_vm2 = vcmask (!%p805_p6), 261120  }
  0x79   : > { %v909_v9 = vpack.c.bf16 %v409_v8, %v408_v6  ;;  %v913_v12 = vpack.c.bf16 %v411_v11, %v410_v10  ;;  %v402_v13 = vld [vmem:[%s348_s14] sm:$0xff]  ;;  %v413_v15 = vld [vmem:[%s1483_s16 + $0x38] sm:$0xff]  ;;  %v415_v18 = vld [vmem:[%s1483_s16 + $0x48] sm:$0xff] }
  0x7a   : > { %906 = vmatprep.subr.bf16.mxu0 %v905_v7  ;;  %v412_v14 = vld [vmem:[%s1483_s16 + $0x30] sm:$0xff]  ;;  %883 = vmatprep.mubr.f32.mxu0 %v402_v13  ;;  %v414_v17 = vld [vmem:[%s1483_s16 + $0x40] sm:$0xff]  ;;  %v417_v21 = vld [vmem:[%s1483_s16 + $0x58] sm:$0xff] }
  0x7b   : > { %908 = vmatpush3.bf16.msra.mxu0 %v905_v7  ;;  %v917_v16 = vpack.c.bf16 %v413_v15, %v412_v14  ;;  %v921_v19 = vpack.c.bf16 %v415_v18, %v414_v17  ;;  %v416_v20 = vld [vmem:[%s1483_s16 + $0x50] sm:$0xff]  ;;  %v418_v23 = vld [vmem:[%s1483_s16 + $0x60] sm:$0xff]  ;;  %v419_v24 = vld [vmem:[%s1483_s16 + $0x68] sm:$0xff] }
  0x7c   : > { %910 = vmatprep.subr.bf16.mxu0 %v909_v9  ;;  %v925_v22 = vpack.c.bf16 %v417_v21, %v416_v20  ;;  %v929_v25 = vpack.c.bf16 %v419_v24, %v418_v23  ;;  %v420_v26 = vld [vmem:[%s1483_s16 + $0x70] sm:$0xff]  ;;  %v421_v27 = vld [vmem:[%s1483_s16 + $0x78] sm:$0xff]  ;;  %v405_v30 = vld [vmem:[#allocation2 + $0x8] sm:$0xff] }
  0x7d   : > { %v933_v28 = vpack.c.bf16 %v421_v27, %v420_v26  ;;  %v403_v29 = vld [vmem:[%s348_s14 + $0x8] sm:$0xff]  ;;  %v404_v31 = vld [vmem:[#allocation2] sm:$0xff]  ;;  %v521_v38 = vld [vmem:[%s1630_s4 + $0x10] sm:$0xff] (!%p805_p6) }
  0x7e   : > { %v519_v36 = vld [vmem:[%s1630_s4] sm:$0xff] (!%p805_p6)  ;;  %v520_v37 = vld [vmem:[%s1630_s4 + $0x8] sm:$0xff] (!%p805_p6)  ;;  %v522_v40 = vld [vmem:[%s1630_s4 + $0x18] sm:$0xff] (!%p805_p6) }
  0x7f   : > { %912 = vmatpush3.bf16.msra.mxu0 %v909_v9  ;;  %v937_v39 = vpack.c.bf16 (!%p805_p6), %v520_v37, %v519_v36  ;;  %v941_v41 = vpack.c.bf16 (!%p805_p6), %v522_v40, %v521_v38  ;;  %v523_v42 = vld [vmem:[%s1630_s4 + $0x20] sm:$0xff] (!%p805_p6)  ;;  %v524_v43 = vld [vmem:[%s1630_s4 + $0x28] sm:$0xff] (!%p805_p6)  ;;  %v525_v48 = vld [vmem:[%s1630_s4 + $0x30] sm:$0xff] (!%p805_p6) }
  0x80   : > { %914 = vmatprep.subr.bf16.mxu0 %v913_v12  ;;  %v806_v45 = vld [vmem:[%s1629_s3] ss:$0 sm:$0xff] (!%p805_p6)  ;;  %v945_v47 = vpack.c.bf16 (!%p805_p6), %v524_v43, %v523_v42  ;;  %v526_v49 = vld [vmem:[%s1630_s4 + $0x38] sm:$0xff] (!%p805_p6) }
  0x81   : > { %v949_v52 = vpack.c.bf16 (!%p805_p6), %v526_v49, %v525_v48  ;;  %v807_v55 = vld [vmem:[%s1631_s5] ss:$0 sm:$0xff] (!%p805_p6) }
  0x83   : > { %916 = vmatpush3.bf16.msra.mxu0 %v913_v12 }
  0x84   : > { %918 = vmatprep.subr.bf16.mxu0 %v917_v16 }
  0x87   : > { %920 = vmatpush3.bf16.msra.mxu0 %v917_v16 }
  0x88   : > { %922 = vmatprep.subr.bf16.mxu0 %v921_v19 }
  0x8b   : > { %924 = vmatpush3.bf16.msra.mxu0 %v921_v19 }
  0x8c   : > { %926 = vmatprep.subr.bf16.mxu0 %v925_v22 }
  0x8f   : > { %928 = vmatpush3.bf16.msra.mxu0 %v925_v22 }
  0x90   : > { %930 = vmatprep.subr.bf16.mxu0 %v929_v25 }
  0x93   : > { %932 = vmatpush3.bf16.msra.mxu0 %v929_v25 }
  0x94   : > { %934 = vmatprep.subr.bf16.mxu0 %v933_v28 }
  0x97   : > { %936 = vmatpush3.bf16.msra.mxu0 %v933_v28 }
  0x98   : > { %938 = vmatprep.subr.bf16.mxu0 (!%p805_p6), %v937_v39 }
  0x9a   : > { %884 = vmatmul.mubr.f32.vlgmr.msra.gmra.mrb[0].mxu0 %v403_v29 }
  0x9b   : > { %940 = vmatpush3.bf16.msra.mxu0 (!%p805_p6), %v937_v39 }
  0x9c   : > { %942 = vmatprep.subr.bf16.mxu0 (!%p805_p6), %v941_v41 }
  0x9f   : > { %944 = vmatpush3.bf16.msra.mxu0 (!%p805_p6), %v941_v41 }
  0xa0   : > { %946 = vmatprep.subr.bf16.mxu0 (!%p805_p6), %v945_v47 }
  0xa3   : > { %948 = vmatpush3.bf16.msra.mxu0 (!%p805_p6), %v945_v47 }
  0xa4   : > { %950 = vmatprep.subr.bf16.mxu0 (!%p805_p6), %v949_v52 }
  0xa7   : > { %952 = vmatpush3.bf16.msra.mxu0 (!%p805_p6), %v949_v52 }
 0x16b   : > { %505 = sbr.rel (%p805_p6) target bundleno = 598 (0x256), region = 100 }
 0x16d   : > { %v885_v32 = vpop.f32.mrb[0].mxu0 }
 0x16e   : > { %v498_v33 = vadd.f32 %v885_v32, %v405_v30  ;;  %v488_v34 = vpop.f32.mrb[1].mxu0 }
 0x16f   : > { %v497_v35 = vadd.f32 %v488_v34, %v404_v31 }
 0x170   : > { %501 = vst.msk [vmem:[#allocation2 + $0x8] sm:$0xff] %vm499_vm1, %v498_v33 }
 0x171   : > { %500 = vst.msk [vmem:[#allocation2] sm:$0xff] %vm499_vm1, %v497_v35 }
 0x177   : > { %v507_v51 = vld [vmem:[#allocation2 + $0x8] sm:$0xff] }
 0x178   : > { %v506_v44 = vld [vmem:[#allocation2] sm:$0xff]  ;;  %v516_v53 = vadd.f32 %v806_v45, %v507_v51 }
 0x179   : > { %v515_v46 = vadd.f32 %v806_v45, %v506_v44 }
 0x17a   : > { %v518_v54 = vmax.f32 %v516_v53, 0.0 }
 0x17b   : > { %v517_v50 = vmax.f32 %v515_v46, 0.0 }
 0x17d   : > { %902 = vmatprep.mubr.msk.f32.mxu0 %vm499_vm1, %v517_v50 }
 0x17e   : > { %903 = vmatmul.mubr.msk.f32.vlgmr.msra.gmra.mrb[0].mxu0 %vm499_vm1, %v518_v54 }
 0x251   : > { %v904_v56 = vpop.f32.mrb[0].mxu0 }
 0x252   : > { %v612_v57 = vadd.f32 %v904_v56, %v807_v55  ;;  %v606_v58 = vpop.f32.mrb[1].mxu0 }
 0x253   : > { %v607_v59 = vadd.f32 %v807_v55, %v606_v58 }
 0x254   : > { %617 = vst.msk [vmem:[%s1486_s13 + $0x8] sm:$0xff] %vm615_vm2, %v612_v57 }
 0x255   : > { %616 = vst.msk [vmem:[%s1486_s13] sm:$0xff] %vm615_vm2, %v607_v59 }
 0x256 PF: > { %s1548_s21 = scalar_lea.sflag [#allocation7], %s375_s19  ;;  %625 = sbr.rel (!%p1416_p1) target bundleno = 633 (0x279), region = 104 }
 0x257   : > { %s811_s30 = sshll.u32 (%p1416_p1), %s1251_s7, 1 }
 0x258   : > { %s627_s12 = ssub.s32 (%p1416_p1), 3, %s811_s30 }
 0x259   : > { %p628_p7 = scmp.lt.s32.totalorder (%p1416_p1), %s627_s12, 2 }
 0x25d   : > { %s1670_s12 = smov (!%p628_p7, %s627_s12), 2 }
 0x25e   : > { %s1553_s17 = sshll.u32 %s1670_s12, 7 }
 0x25f   : > { %s632_s16 = ssub.s32 256, %s1553_s17 }
 0x260   : > { %633 = vsyncadd %s1548_s21, %s632_s16  ;;  %p813_p8 = scmp.ne.s32.totalorder %s1553_s17, 0  ;;  %s822_s19 = sshll.u32 %s1251_s7, 8 }
 0x261   : > { %s1562_s28 = scalar_lea.hbm %s1632_s6, %s822_s19  ;;  %s638_s25 = sshll.u32 %s1486_s13, 4  ;;  %s1565_s25 = int_to_ptr.vmem [resolvable:$true] %s638_s25 }
 0x262   : > { %s1119_s20 = scalar_lea.vmem %s1565_s25, %s1553_s17  ;;  %s1299_s11 = smov [#allocation6]  }
 0x263   : > { %p1120_p1 = scmp.ne.s32.totalorder %s1565_s25, %s1119_s20  ;;  %s1123_s15 = sshll.u32 %s1299_s11, 4  ;;  %s1124_s15 = int_to_ptr.vmem [resolvable:$false] %s1123_s15 }
 0x264   : > { %s1125_s7 = scalar_lea.vmem %s1124_s15, 512  ;;  %p1126_p11 = scmp.lt.s32.totalorder %s1565_s25, %s1124_s15 }
 0x265   : > { %p1121_p9 = pnand %p1120_p1, %p813_p8  ;;  %p1127_p12 = scmp.lt.s32.totalorder %s1125_s7, %s1119_s20 }
 0x267   : > { %p1122_p10 = pneg %p1121_p9  ;;  %p1128_p13 = por %p1127_p12, %p1126_p11 }
 0x269   : > { %p1129_p0 = pnand %p1128_p13, %p1122_p10 }
 0x26b   : > { %1132 = shalt.err (!%p1129_p0)
}
 0x26c   : > { %s1133_s13 = scalar_lea.hbm %s1562_s28, %s1553_s17  ;;  %s1137_s30 = scalar_lea.hbm %s1632_s6, 384 }
 0x26d   : > { %p1134_p2 = scmp.ne.s32.totalorder %s1562_s28, %s1133_s13  ;;  %p1138_p6 = scmp.lt.u32.totalorder %s1562_s28, %s1632_s6 }
 0x26e   : > { %p1139_p7 = scmp.lt.u32.totalorder %s1137_s30, %s1133_s13  ;;  %p1141_p9 = scmp.lt.u32.totalorder %s1133_s13, %s1562_s28 }
 0x26f   : > { %p1135_p4 = pnand %p1134_p2, %p813_p8 }
 0x270   : > { %p1140_p1 = por %p1139_p7, %p1138_p6 }
 0x271   : > { %p1136_p5 = pneg %p1135_p4 }
 0x272   : > { %p1142_p10 = por %p1141_p9, %p1140_p1 }
 0x274   : > { %p1143_p11 = pnand %p1142_p10, %p1136_p5 }
 0x276   : > { %1146 = shalt.err (!%p1143_p11)
}
 0x277   : > { %s1300_s19 = smov 128   ;;  %s1301_s23 = smov 8  }
 0x278   : > { %644 = dma.vmem_to_hbm [thread:$0]  (%p813_p8), %s1565_s25, %s1553_s17, %s1562_s28, %s1548_s21, %s1300_s19, %s1300_s19, %s1301_s23  }
 0x279 PF: > { %p958_p12 = scmp.ge.s32.totalorder %s1263_s10, 2  ;;  %s653_s14 = sand.u32 1, %s1227_s26  }
 0x27a   : > { %s654_s20 = scalar_lea.sflag [#allocation7], %s653_s14 }
 0x27b   : > { %p955_p13 = pnand %p958_p12, %p1420_p3 }
 0x27d   : > { %1222 = dma.done.wait (!%p955_p13), %s654_s20, 256  }
 0x27e   : > { %1224 = vsyncadd (!%p955_p13), %s654_s20, 4294967040  ;;  %s25_s10 = sadd.s32 1, %s1263_s10   ;;  %s1642_s11 = sld [smem:[#allocation12_spill]] }
 0x27f   : > { %p22_p0 = scmp.ge.s32.totalorder %s25_s10, 8   ;;  %s1643_s21 = sld [smem:[#allocation13_spill]] }
 0x280   : > { %s1644_s17 = sld [smem:[#allocation10_spill]]  ;;  %s1645_s25 = sld [smem:[#allocation11_spill]] }
 0x281   : > { %s1646_s26 = smov %s1231_s27  ;;  %s1647_s27 = smov %s1235_s0 }
 0x282   : > { %s1649_s28 = smov %s1243_s29  ;;  %s1651_s30 = smov %s1255_s8 }
 0x283   : > { %s1652_s7 = smov %s1259_s9  ;;  %24 = sbr.rel (!%p22_p0) target bundleno = 21 (0x15), region = 173 }
 0x284   : > { %s1648_s0 = smov %s1642_s11 }
 0x285   : > { %s1650_s29 = smov %s1643_s21 }
 0x286   : > { %s1653_s8 = smov %s1644_s17  ;;  %s1654_s9 = smov %s1645_s25 }
 0x28a   :  { %659 = vsyncpa [#allocation7], 1 }
 0x28b   :  { %661 = vsyncpa [#allocation7 + $0x1], 1 }

</bundles_post_ra>
